<compile_context>
chip_gen: v5e
topology: v5e:2x2
jax: 0.10.0
libtpu: 0.0.40
codegen_flags: <defaults>
</compile_context>

<pallas_src>
import jax
import jax.numpy as jnp
from jax import lax
from jax.experimental import pallas as pl
from jax.experimental.pallas import tpu as pltpu


def _round_up(x: int, m: int) -> int:
    return (x + m - 1) // m * m


def graph_layer_kernel(
    gath_ref,      # [TE, Fn]  node_features[senders] tile
    ef_ref,        # [TE, Fe]  edge-feature tile
    recv_ref,      # [1, TE]   receiver index per edge (int32, -1 => padding)
    nf_ref,        # [N, Fn]   node features (resident across the grid)
    we_n_ref,      # [Fn, Hp]  edge-model weight rows for gathered node feats
    we_e_ref,      # [Fe, Hp]  edge-model weight rows for edge feats
    a_e_ref,       # [1, Hp]   edge PReLU slope
    wn_h_ref,      # [Hp, Hp]  node-model weight rows for aggregated messages
    wn_n_ref,      # [Fn, Hp]  node-model weight rows for node feats
    a_n_ref,       # [1, Hp]   node PReLU slope
    node_out_ref,  # [N, Hp]   (resident output, written on the last tile)
    edge_out_ref,  # [TE, Hp]  per-tile edge output
    acc_ref,       # [N, Hp]   f32 scratch accumulator (scatter-add target)
):
    i = pl.program_id(0)

    @pl.when(i == 0)
    def _init():
        acc_ref[...] = jnp.zeros_like(acc_ref)

    # --- edge model: Linear(cat([gathered, ef])) + PReLU (per edge tile) ---
    edge_pre = (
        jnp.dot(gath_ref[...], we_n_ref[...], preferred_element_type=jnp.float32)
        + jnp.dot(ef_ref[...], we_e_ref[...], preferred_element_type=jnp.float32)
    )                                                            # [TE, Hp]
    a_e = a_e_ref[...]
    edge_out = jnp.where(edge_pre >= 0.0, edge_pre, a_e * edge_pre)
    edge_out_ref[...] = edge_out

    # --- scatter-add (index_add_ over receivers) via per-tile one-hot matmul ---
    n = acc_ref.shape[0]
    te = edge_out_ref.shape[0]
    row_iota = lax.broadcasted_iota(jnp.int32, (n, te), 0)       # [N, TE]
    recv_oh = (row_iota == recv_ref[...]).astype(jnp.float32)    # [N, TE]
    acc_ref[...] += jnp.dot(recv_oh, edge_out,
                            preferred_element_type=jnp.float32)  # [N, Hp]

    # --- node model on the last edge tile: Linear(cat([upd, nf])) + PReLU ---
    @pl.when(i == pl.num_programs(0) - 1)
    def _finalize():
        node_pre = (
            jnp.dot(acc_ref[...], wn_h_ref[...], preferred_element_type=jnp.float32)
            + jnp.dot(nf_ref[...], wn_n_ref[...], preferred_element_type=jnp.float32)
        )                                                        # [N, Hp]
        a_n = a_n_ref[...]
        node_out_ref[...] = jnp.where(node_pre >= 0.0, node_pre, a_n * node_pre)


def graph_layer(node_features, edge_index, edge_features, params, *, edge_tile=128):
    """Pallas wrapper.

    node_features [N, Fn] f32, edge_index [2, E] int32 (row 0 = receivers,
    row 1 = senders), edge_features [E, Fe] f32.
    Returns (updated_node_features [N, H], updated_edge_features [E, H]).
    """
    N, Fn = node_features.shape
    E, Fe = edge_features.shape
    H = params["a_edge"].shape[0]

    receivers = edge_index[0].astype(jnp.int32)
    senders = edge_index[1].astype(jnp.int32)

    nf = node_features.astype(jnp.float32)
    ef = edge_features.astype(jnp.float32)

    # Direct row gather (plain XLA take) instead of an O(E*N) one-hot matmul.
    gathered = jnp.take(nf, senders, axis=0)                     # [E, Fn]

    # Pad the edge axis to a multiple of the tile; padded receivers get -1 so
    # they scatter nowhere.
    te = edge_tile
    e_pad = _round_up(max(E, te), te)
    pad_e = e_pad - E
    gathered = jnp.pad(gathered, ((0, pad_e), (0, 0)))
    ef_p = jnp.pad(ef, ((0, pad_e), (0, 0)))
    recv_row = jnp.pad(receivers, (0, pad_e), constant_values=-1).reshape(1, e_pad)

    # Pad the hidden dim to a lane-dense multiple of 128 (zero columns stay
    # exactly zero through PReLU / scatter / node MLP and are sliced off).
    hp = _round_up(max(H, 128), 128)
    we = params["w_edge"].astype(jnp.float32)                    # [Fn+Fe, H]
    wn = params["w_node"].astype(jnp.float32)                    # [H+Fn, H]
    we_n = jnp.pad(we[:Fn], ((0, 0), (0, hp - H)))               # [Fn, Hp]
    we_e = jnp.pad(we[Fn:], ((0, 0), (0, hp - H)))               # [Fe, Hp]
    wn_h = jnp.pad(wn[:H], ((0, hp - H), (0, hp - H)))           # [Hp, Hp]
    wn_n = jnp.pad(wn[H:], ((0, 0), (0, hp - H)))                # [Fn, Hp]
    a_e = jnp.pad(params["a_edge"].astype(jnp.float32), (0, hp - H)).reshape(1, hp)
    a_n = jnp.pad(params["a_node"].astype(jnp.float32), (0, hp - H)).reshape(1, hp)

    n_blocks = e_pad // te

    grid_spec = pltpu.PrefetchScalarGridSpec(
        num_scalar_prefetch=0,
        grid=(n_blocks,),
        in_specs=[
            pl.BlockSpec((te, Fn), lambda i: (i, 0)),    # gathered sender feats
            pl.BlockSpec((te, Fe), lambda i: (i, 0)),    # edge features
            pl.BlockSpec((1, te), lambda i: (0, i)),     # receiver ids (lane-dense)
            pl.BlockSpec((N, Fn), lambda i: (0, 0)),     # node features (resident)
            pl.BlockSpec((Fn, hp), lambda i: (0, 0)),
            pl.BlockSpec((Fe, hp), lambda i: (0, 0)),
            pl.BlockSpec((1, hp), lambda i: (0, 0)),
            pl.BlockSpec((hp, hp), lambda i: (0, 0)),
            pl.BlockSpec((Fn, hp), lambda i: (0, 0)),
            pl.BlockSpec((1, hp), lambda i: (0, 0)),
        ],
        out_specs=(
            pl.BlockSpec((N, hp), lambda i: (0, 0)),     # node_out: resident/accumulated
            pl.BlockSpec((te, hp), lambda i: (i, 0)),    # edge_out: per edge tile
        ),
        scratch_shapes=[pltpu.VMEM((N, hp), jnp.float32)],
    )

    flops = (2 * e_pad * Fn * hp + 2 * e_pad * Fe * hp      # edge MLP
             + 2 * e_pad * N * hp                           # scatter one-hot matmul
             + 2 * N * hp * hp + 2 * N * Fn * hp)           # node MLP
    bytes_accessed = 4 * (e_pad * (Fn + Fe + 1) + N * Fn
                          + Fn * hp + Fe * hp + hp + hp * hp + Fn * hp + hp
                          + N * hp + e_pad * hp)
    cost = pl.CostEstimate(flops=flops, transcendentals=0,
                           bytes_accessed=bytes_accessed)

    node_out, edge_out = pl.pallas_call(
        graph_layer_kernel,
        out_shape=(
            jax.ShapeDtypeStruct((N, hp), jnp.float32),
            jax.ShapeDtypeStruct((e_pad, hp), jnp.float32),
        ),
        grid_spec=grid_spec,
        compiler_params=pltpu.CompilerParams(
            dimension_semantics=("arbitrary",),          # reduction into node acc
            vmem_limit_bytes=32 * 1024 * 1024,
        ),
        cost_estimate=cost,
    )(gathered, ef_p, recv_row, nf, we_n, we_e, a_e, wn_h, wn_n, a_n)

    return node_out[:, :H], edge_out[:E, :H]


def reference(node_features, edge_index, edge_features, params):
    """Pure-JAX reference mirroring the PyTorch forward (eval mode)."""
    receivers, senders = edge_index[0], edge_index[1]
    N, _ = node_features.shape
    H = params["a_edge"].shape[0]
    e_in = jnp.concatenate([node_features[senders], edge_features], axis=-1)
    e_pre = e_in @ params["w_edge"]
    a_e = params["a_edge"]
    e_out = jnp.where(e_pre >= 0, e_pre, a_e * e_pre)
    upd = jnp.zeros((N, H), jnp.float32).at[receivers].add(e_out)
    n_in = jnp.concatenate([upd, node_features], axis=-1)
    n_pre = n_in @ params["w_node"]
    a_n = params["a_node"]
    n_out = jnp.where(n_pre >= 0, n_pre, a_n * n_pre)
    return n_out, e_out


if __name__ == "__main__":
    # Small deterministic problem, large enough to exercise multiple edge
    # tiles (E_pad = 384 -> 3 grid steps) and edge padding.
    N, E = 64, 300         # nodes, edges
    Fn, Fe, H = 8, 4, 32   # node feat, edge feat, hidden

    key = jax.random.PRNGKey(0)
    k1, k2, k3, k4, k5, k6 = jax.random.split(key, 6)

    node_features = jax.random.normal(k1, (N, Fn), jnp.float32)
    edge_features = jax.random.normal(k2, (E, Fe), jnp.float32)
    receivers = jax.random.randint(k3, (E,), 0, N, jnp.int32)
    senders = jax.random.randint(k4, (E,), 0, N, jnp.int32)
    edge_index = jnp.stack([receivers, senders], axis=0)   # [2, E]

    params = {
        # Linear(edge_input_size=Fn+Fe -> H, bias=False); stored as [in, H]
        "w_edge": jax.random.normal(k5, (Fn + Fe, H), jnp.float32) * 0.1,
        # Linear(node_input_size=H+Fn -> H, bias=False)
        "w_node": jax.random.normal(k6, (H + Fn, H), jnp.float32) * 0.1,
        # PReLU(hidden_size) default init = 0.25 per channel
        "a_edge": jnp.full((H,), 0.25, jnp.float32),
        "a_node": jnp.full((H,), 0.25, jnp.float32),
    }

    node_out, edge_out = graph_layer(node_features, edge_index, edge_features, params)
    jax.block_until_ready((node_out, edge_out))

    ref_node, ref_edge = reference(node_features, edge_index, edge_features, params)
    assert jnp.allclose(edge_out, ref_edge, atol=2e-4, rtol=2e-4)
    assert jnp.allclose(node_out, ref_node, atol=2e-4, rtol=2e-4)

    print("KERNEL_OK")
</pallas_src>

<mosaic_0001>
module attributes {stable_mosaic.version = 11 : i64} {
  func.func @graph_layer_kernel(%arg0: i32, %arg1: memref<128x8xf32, #tpu.memory_space<vmem>>, %arg2: memref<128x4xf32, #tpu.memory_space<vmem>>, %arg3: memref<1x128xi32, #tpu.memory_space<vmem>>, %arg4: memref<64x8xf32, #tpu.memory_space<vmem>>, %arg5: memref<8x128xf32, #tpu.memory_space<vmem>>, %arg6: memref<4x128xf32, #tpu.memory_space<vmem>>, %arg7: memref<1x128xf32, #tpu.memory_space<vmem>>, %arg8: memref<128x128xf32, #tpu.memory_space<vmem>>, %arg9: memref<8x128xf32, #tpu.memory_space<vmem>>, %arg10: memref<1x128xf32, #tpu.memory_space<vmem>>, %arg11: memref<64x128xf32, #tpu.memory_space<vmem>>, %arg12: memref<128x128xf32, #tpu.memory_space<vmem>>, %arg13: memref<64x128xf32, #tpu.memory_space<vmem>>) attributes {dimension_semantics = [#tpu.dimension_semantics<arbitrary>], iteration_bounds = array<i64: 3>, scalar_prefetch = 0 : i64, scratch_operands = 1 : i64, tpu.core_type = #tpu.core_type<tc>, window_params = [{transform_indices = @transform_0, window_bounds = array<i64: 128, 8>}, {transform_indices = @transform_1, window_bounds = array<i64: 128, 4>}, {transform_indices = @transform_2, window_bounds = array<i64: 1, 128>}, {pipeline_mode = #tpu.pipeline_mode<synchronous>, transform_indices = @transform_3, window_bounds = array<i64: 64, 8>}, {pipeline_mode = #tpu.pipeline_mode<synchronous>, transform_indices = @transform_4, window_bounds = array<i64: 8, 128>}, {pipeline_mode = #tpu.pipeline_mode<synchronous>, transform_indices = @transform_5, window_bounds = array<i64: 4, 128>}, {pipeline_mode = #tpu.pipeline_mode<synchronous>, transform_indices = @transform_6, window_bounds = array<i64: 1, 128>}, {pipeline_mode = #tpu.pipeline_mode<synchronous>, transform_indices = @transform_7, window_bounds = array<i64: 128, 128>}, {pipeline_mode = #tpu.pipeline_mode<synchronous>, transform_indices = @transform_8, window_bounds = array<i64: 8, 128>}, {pipeline_mode = #tpu.pipeline_mode<synchronous>, transform_indices = @transform_9, window_bounds = array<i64: 1, 128>}, {pipeline_mode = #tpu.pipeline_mode<synchronous>, transform_indices = @transform_10, window_bounds = array<i64: 64, 128>}, {transform_indices = @transform_11, window_bounds = array<i64: 128, 128>}]} {
    %c0_i32 = arith.constant 0 : i32
    %0 = arith.cmpi eq, %arg0, %c0_i32 : i32
    %1 = arith.extui %0 : i1 to i32
    %c0_i32_0 = arith.constant 0 : i32
    %2 = arith.cmpi ne, %1, %c0_i32_0 : i32
    scf.if %2 {
      %cst_22 = arith.constant 0.000000e+00 : f32
      %30 = vector.broadcast %cst_22 : f32 to vector<64x128xf32>
      %c0_23 = arith.constant 0 : index
      %c0_24 = arith.constant 0 : index
      %31 = vector.load %arg13[%c0_23, %c0_24] : memref<64x128xf32, #tpu.memory_space<vmem>>, vector<64x128xf32>
      tpu.vector_store %arg13[%c0_23, %c0_24], %30 {strides = array<i32>} : memref<64x128xf32, #tpu.memory_space<vmem>>, vector<64x128xf32>,
    } else {
    }
    %c0 = arith.constant 0 : index
    %c0_1 = arith.constant 0 : index
    %3 = vector.load %arg1[%c0, %c0_1] : memref<128x8xf32, #tpu.memory_space<vmem>>, vector<128x8xf32>
    %c0_2 = arith.constant 0 : index
    %c0_3 = arith.constant 0 : index
    %4 = vector.load %arg5[%c0_2, %c0_3] : memref<8x128xf32, #tpu.memory_space<vmem>>, vector<8x128xf32>
    %cst = arith.constant dense<0.000000e+00> : vector<128x128xf32>
    %5 = tpu.matmul %3, %4, %cst {dimension_numbers = #tpu.dot_dimension_numbers<[1], [0], [0], [1], [0, 0, 1, 1], [], []>} : vector<128x8xf32>, vector<8x128xf32>, vector<128x128xf32> -> vector<128x128xf32>
    %c0_4 = arith.constant 0 : index
    %c0_5 = arith.constant 0 : index
    %6 = vector.load %arg2[%c0_4, %c0_5] : memref<128x4xf32, #tpu.memory_space<vmem>>, vector<128x4xf32>
    %c0_6 = arith.constant 0 : index
    %c0_7 = arith.constant 0 : index
    %7 = vector.load %arg6[%c0_6, %c0_7] : memref<4x128xf32, #tpu.memory_space<vmem>>, vector<4x128xf32>
    %cst_8 = arith.constant dense<0.000000e+00> : vector<128x128xf32>
    %8 = tpu.matmul %6, %7, %cst_8 {dimension_numbers = #tpu.dot_dimension_numbers<[1], [0], [0], [1], [0, 0, 1, 1], [], []>} : vector<128x4xf32>, vector<4x128xf32>, vector<128x128xf32> -> vector<128x128xf32>
    %9 = arith.addf %5, %8 : vector<128x128xf32>
    %c0_9 = arith.constant 0 : index
    %c0_10 = arith.constant 0 : index
    %10 = vector.load %arg7[%c0_9, %c0_10] : memref<1x128xf32, #tpu.memory_space<vmem>>, vector<1x128xf32>
    %cst_11 = arith.constant 0.000000e+00 : f32
    %11 = vector.broadcast %cst_11 : f32 to vector<128x128xf32>
    %12 = arith.cmpf oge, %9, %11 : vector<128x128xf32>
    %13 = vector.broadcast %10 : vector<1x128xf32> to vector<128x128xf32>
    %14 = arith.mulf %13, %9 : vector<128x128xf32>
    %15 = arith.select %12, %9, %14 : vector<128x128xi1>, vector<128x128xf32>
    %c0_12 = arith.constant 0 : index
    %c0_13 = arith.constant 0 : index
    %16 = vector.load %arg12[%c0_12, %c0_13] : memref<128x128xf32, #tpu.memory_space<vmem>>, vector<128x128xf32>
    tpu.vector_store %arg12[%c0_12, %c0_13], %15 {strides = array<i32>} : memref<128x128xf32, #tpu.memory_space<vmem>>, vector<128x128xf32>,
    %17 = tpu.iota {dimensions = array<i32: 0>} : vector<64x128xi32>
    %c0_14 = arith.constant 0 : index
    %c0_15 = arith.constant 0 : index
    %18 = vector.load %arg3[%c0_14, %c0_15] : memref<1x128xi32, #tpu.memory_space<vmem>>, vector<1x128xi32>
    %19 = vector.broadcast %18 : vector<1x128xi32> to vector<64x128xi32>
    %20 = arith.cmpi eq, %17, %19 : vector<64x128xi32>
    %21 = arith.extui %20 : vector<64x128xi1> to vector<64x128xi32>
    %22 = arith.sitofp %21 : vector<64x128xi32> to vector<64x128xf32>
    %c0_16 = arith.constant 0 : index
    %c0_17 = arith.constant 0 : index
    %23 = vector.load %arg13[%c0_16, %c0_17] : memref<64x128xf32, #tpu.memory_space<vmem>>, vector<64x128xf32>
    %cst_18 = arith.constant dense<0.000000e+00> : vector<64x128xf32>
    %24 = tpu.matmul %22, %15, %cst_18 {dimension_numbers = #tpu.dot_dimension_numbers<[1], [0], [0], [1], [0, 0, 1, 1], [], []>} : vector<64x128xf32>, vector<128x128xf32>, vector<64x128xf32> -> vector<64x128xf32>
    %25 = arith.addf %23, %24 : vector<64x128xf32>
    %c0_19 = arith.constant 0 : index
    %c0_20 = arith.constant 0 : index
    %26 = vector.load %arg13[%c0_19, %c0_20] : memref<64x128xf32, #tpu.memory_space<vmem>>, vector<64x128xf32>
    tpu.vector_store %arg13[%c0_19, %c0_20], %25 {strides = array<i32>} : memref<64x128xf32, #tpu.memory_space<vmem>>, vector<64x128xf32>,
    %c2_i32 = arith.constant 2 : i32
    %27 = arith.cmpi eq, %arg0, %c2_i32 : i32
    %28 = arith.extui %27 : i1 to i32
    %c0_i32_21 = arith.constant 0 : i32
    %29 = arith.cmpi ne, %28, %c0_i32_21 : i32
    scf.if %29 {
      %c0_22 = arith.constant 0 : index
      %c0_23 = arith.constant 0 : index
      %30 = vector.load %arg13[%c0_22, %c0_23] : memref<64x128xf32, #tpu.memory_space<vmem>>, vector<64x128xf32>
      %c0_24 = arith.constant 0 : index
      %c0_25 = arith.constant 0 : index
      %31 = vector.load %arg8[%c0_24, %c0_25] : memref<128x128xf32, #tpu.memory_space<vmem>>, vector<128x128xf32>
      %cst_26 = arith.constant dense<0.000000e+00> : vector<64x128xf32>
      %32 = tpu.matmul %30, %31, %cst_26 {dimension_numbers = #tpu.dot_dimension_numbers<[1], [0], [0], [1], [0, 0, 1, 1], [], []>} : vector<64x128xf32>, vector<128x128xf32>, vector<64x128xf32> -> vector<64x128xf32>
      %c0_27 = arith.constant 0 : index
      %c0_28 = arith.constant 0 : index
      %33 = vector.load %arg4[%c0_27, %c0_28] : memref<64x8xf32, #tpu.memory_space<vmem>>, vector<64x8xf32>
      %c0_29 = arith.constant 0 : index
      %c0_30 = arith.constant 0 : index
      %34 = vector.load %arg9[%c0_29, %c0_30] : memref<8x128xf32, #tpu.memory_space<vmem>>, vector<8x128xf32>
      %cst_31 = arith.constant dense<0.000000e+00> : vector<64x128xf32>
      %35 = tpu.matmul %33, %34, %cst_31 {dimension_numbers = #tpu.dot_dimension_numbers<[1], [0], [0], [1], [0, 0, 1, 1], [], []>} : vector<64x8xf32>, vector<8x128xf32>, vector<64x128xf32> -> vector<64x128xf32>
      %36 = arith.addf %32, %35 : vector<64x128xf32>
      %c0_32 = arith.constant 0 : index
      %c0_33 = arith.constant 0 : index
      %37 = vector.load %arg10[%c0_32, %c0_33] : memref<1x128xf32, #tpu.memory_space<vmem>>, vector<1x128xf32>
      %cst_34 = arith.constant 0.000000e+00 : f32
      %38 = vector.broadcast %cst_34 : f32 to vector<64x128xf32>
      %39 = arith.cmpf oge, %36, %38 : vector<64x128xf32>
      %40 = vector.broadcast %37 : vector<1x128xf32> to vector<64x128xf32>
      %41 = arith.mulf %40, %36 : vector<64x128xf32>
      %42 = arith.select %39, %36, %41 : vector<64x128xi1>, vector<64x128xf32>
      %c0_35 = arith.constant 0 : index
      %c0_36 = arith.constant 0 : index
      %43 = vector.load %arg11[%c0_35, %c0_36] : memref<64x128xf32, #tpu.memory_space<vmem>>, vector<64x128xf32>
      tpu.vector_store %arg11[%c0_35, %c0_36], %42 {strides = array<i32>} : memref<64x128xf32, #tpu.memory_space<vmem>>, vector<64x128xf32>,
    } else {
    }
    return
  }
  func.func @transform_0(%arg0: i32) -> (i32, i32) {
    %c0_i32 = arith.constant 0 : i32
    %c0_i32_0 = arith.constant 0 : i32
    return %arg0, %c0_i32 : i32, i32
  }
  func.func @transform_1(%arg0: i32) -> (i32, i32) {
    %c0_i32 = arith.constant 0 : i32
    %c0_i32_0 = arith.constant 0 : i32
    return %arg0, %c0_i32 : i32, i32
  }
  func.func @transform_2(%arg0: i32) -> (i32, i32) {
    %c0_i32 = arith.constant 0 : i32
    %c0_i32_0 = arith.constant 0 : i32
    return %c0_i32, %arg0 : i32, i32
  }
  func.func @transform_3(%arg0: i32) -> (i32, i32) {
    %c0_i32 = arith.constant 0 : i32
    %c0_i32_0 = arith.constant 0 : i32
    %c0_i32_1 = arith.constant 0 : i32
    return %c0_i32, %c0_i32_0 : i32, i32
  }
  func.func @transform_4(%arg0: i32) -> (i32, i32) {
    %c0_i32 = arith.constant 0 : i32
    %c0_i32_0 = arith.constant 0 : i32
    %c0_i32_1 = arith.constant 0 : i32
    return %c0_i32, %c0_i32_0 : i32, i32
  }
  func.func @transform_5(%arg0: i32) -> (i32, i32) {
    %c0_i32 = arith.constant 0 : i32
    %c0_i32_0 = arith.constant 0 : i32
    %c0_i32_1 = arith.constant 0 : i32
    return %c0_i32, %c0_i32_0 : i32, i32
  }
  func.func @transform_6(%arg0: i32) -> (i32, i32) {
    %c0_i32 = arith.constant 0 : i32
    %c0_i32_0 = arith.constant 0 : i32
    %c0_i32_1 = arith.constant 0 : i32
    return %c0_i32, %c0_i32_0 : i32, i32
  }
  func.func @transform_7(%arg0: i32) -> (i32, i32) {
    %c0_i32 = arith.constant 0 : i32
    %c0_i32_0 = arith.constant 0 : i32
    %c0_i32_1 = arith.constant 0 : i32
    return %c0_i32, %c0_i32_0 : i32, i32
  }
  func.func @transform_8(%arg0: i32) -> (i32, i32) {
    %c0_i32 = arith.constant 0 : i32
    %c0_i32_0 = arith.constant 0 : i32
    %c0_i32_1 = arith.constant 0 : i32
    return %c0_i32, %c0_i32_0 : i32, i32
  }
  func.func @transform_9(%arg0: i32) -> (i32, i32) {
    %c0_i32 = arith.constant 0 : i32
    %c0_i32_0 = arith.constant 0 : i32
    %c0_i32_1 = arith.constant 0 : i32
    return %c0_i32, %c0_i32_0 : i32, i32
  }
  func.func @transform_10(%arg0: i32) -> (i32, i32) {
    %c0_i32 = arith.constant 0 : i32
    %c0_i32_0 = arith.constant 0 : i32
    %c0_i32_1 = arith.constant 0 : i32
    return %c0_i32, %c0_i32_0 : i32, i32
  }
  func.func @transform_11(%arg0: i32) -> (i32, i32) {
    %c0_i32 = arith.constant 0 : i32
    %c0_i32_0 = arith.constant 0 : i32
    return %arg0, %c0_i32 : i32, i32
  }
}

</mosaic_0001>

<bundles_post_ra>
// kernel: tpu_custom_call.1
= control target key start
LH: loop header
LB: loop body
LE: loop exit
PB: predicated region body
PF: predicated region fallthrough
CT: control target
= control target key end

     0   :  { %s1840_s0 = inlined_call_operand.vmem [shape: f32[384,8], index: 0, kind: input, shape index: {}]   ;;  %s1841_s1 = inlined_call_operand.vmem [shape: f32[384,4], index: 1, kind: input, shape index: {}]   ;;  %s1842_s2 = inlined_call_operand.vmem [shape: s32[1,384], index: 2, kind: input, shape index: {}]   ;;  %s1843_s3 = inlined_call_operand.vmem [shape: f32[64,8], index: 3, kind: input, shape index: {}]   ;;  %s1844_s4 = inlined_call_operand.vmem [shape: f32[8,128], index: 4, kind: input, shape index: {}]   ;;  %s1845_s5 = inlined_call_operand.vmem [shape: f32[4,128], index: 5, kind: input, shape index: {}]   ;;  %s1846_s6 = inlined_call_operand.vmem [shape: f32[1,128], index: 6, kind: input, shape index: {}]   ;;  %s1847_s7 = inlined_call_operand.vmem [shape: f32[128,128], index: 7, kind: input, shape index: {}]   ;;  %s1848_s8 = inlined_call_operand.vmem [shape: f32[8,128], index: 8, kind: input, shape index: {}]   ;;  %s1849_s9 = inlined_call_operand.vmem [shape: f32[1,128], index: 9, kind: input, shape index: {}]   ;;  %s1850_s10 = inlined_call_operand.hbm [shape: f32[64,128], index: 10, kind: output, shape index: {0}]   ;;  %s1851_s11 = inlined_call_operand.hbm [shape: f32[384,128], index: 11, kind: output, shape index: {1}]  }
   0x1   :  { %1857 = sst [smem:[#allocation13_spill]] %s1840_s0 }
   0x2   :  { %1858 = sst [smem:[#allocation14_spill]] %s1841_s1 }
   0x3   :  { %1859 = sst [smem:[#allocation15_spill]] %s1842_s2 }
   0x4   :  { %17 = vsyncpa [#allocation4], 0 }
   0x5   :  { %18 = vsyncpa [#allocation6], 0 }
   0x6   :  { %20 = vsyncpa [#allocation6 + $0x1], 0  ;;  %s1499_s17 = smov 0   ;;  %s1501_s18 = smov 0  }
   0x7   :  { %s1503_s19 = smov 0   ;;  %s1505_s20 = smov 0  }
   0x8 LB: > { %1860 = sst [smem:[#allocation9_spill]] %s1428_s19  ;;  %s1520_s21 = sadd.s32 4294967295, %s1432_s20   ;;  %s1432_s20 = sphi %s1505_s20, %s1872_s20   ;;  %s1428_s19 = sphi %s1503_s19, %s1874_s19   ;;  %s1424_s18 = sphi %s1501_s18, %s1876_s18   ;;  %s1420_s17 = sphi %s1499_s17, %s1875_s17  }
   0x9   : > { %s1175_s22 = sadd.s32 4294967294, %s1432_s20   ;;  %s1524_s23 = sadd.s32 1, %s1432_s20  }
   0xa   : > { %1861 = sst [smem:[#allocation10_spill]] %s1524_s23  ;;  %s279_s24 = sadd.s32 1, %s1428_s19 }
   0xb   : > { %s276_s25 = ssub.s32 %s1432_s20, %s1524_s23  ;;  %p289_p0 = scmp.ne.s32.totalorder %s1428_s19, %s1424_s18 }
   0xc   : > { %p277_p1 = scmp.eq.s32.totalorder %s276_s25, 0  ;;  %p290_p2 = scmp.eq.s32.totalorder %s1520_s21, 2 }
   0xd   : > { %p295_p3 = scmp.ne.s32.totalorder %s1424_s18, %s1420_s17  ;;  %p296_p4 = scmp.eq.s32.totalorder %s1175_s22, 2 }
   0xe   : > { %s1535_s26 = scalar_select %p277_p1, %s1428_s19, %s279_s24  }
   0xf   : > { %p1539_p5 = por %p290_p2, %p289_p0  ;;  %p1543_p6 = por %p296_p4, %p295_p3 }
  0x10   : > { %1862 = sst [smem:[#allocation11_spill]] %s1535_s26  ;;  %p1178_p7 = scmp.ge.s32.totalorder %s1432_s20, 1 }
  0x11   : > { %s1864_s28 = scalar_select %p1543_p6, 1, 0 }
  0x12   : > { %p359_p8 = scmp.lt.s32.totalorder %s1432_s20, 4 }
  0x13   : > { %1865 = sst [smem:[#allocation12_spill]] %s1864_s28 }
  0x14   : > { %p360_p9 = pnand %p1178_p7, %p359_p8 }
  0x15   : > { %s1855_s29 = sand.u32 (!%p360_p9), 1, %s1424_s18   ;;  %s1180_s30 = sshll.u32 (!%p360_p9), %s1520_s21, 4 }
  0x16   : > { %363 = sbr.rel (%p360_p9) target bundleno = 686 (0x2ae), region = 60  ;;  %s1179_s12 = sshll.u32 (!%p360_p9), %s1855_s29, 7 }
  0x17   : > { %p408_p10 = scmp.lt.s32.totalorder (!%p360_p9), %s1180_s30, 47  ;;  %p419_p11 = scmp.lt.s32.totalorder (!%p360_p9), %s1520_s21, 2 }
  0x18   : > { %s1866_s0 = sld [smem:[#allocation13_spill]] (!%p360_p9)  ;;  %s1571_s28 = scalar_lea.vmem (!%p360_p9), [#allocation5], %s1179_s12 }
  0x19   : > { %s1867_s1 = sld [smem:[#allocation14_spill]] (!%p360_p9)  ;;  %p1184_p12 = scmp.ne.s32.totalorder (!%p360_p9), %s1520_s21, 0 }
  0x1a   : > { %s1868_s2 = sld [smem:[#allocation15_spill]] (!%p360_p9) }
  0x1b   : > { %s1878_s30 = smov (!%p408_p10, %s1180_s30), 47 }
  0x1c   : > { %s1555_s13 = scalar_select %p419_p11, %s1520_s21, 2 }
  0x1d   : > { %s1181_s14 = sshll.u32 %s1878_s30, 3  ;;  %426 = sbr.rel (%p1184_p12) target bundleno = 43 (0x2b), region = 64 }
  0x1e   : > { %s1560_s22 = scalar_lea.vmem %s1866_s0, %s1181_s14 }
  0x1f   : > { %s1565_s26 = scalar_lea.vmem %s1867_s1, %s1181_s14 }
  0x20   : > { %s421_s29 = scalar_lea.vmem %s1868_s2, %s1555_s13 }
  0x22   : > { %v1434_v0 = vmov 0.0  }
  0x23   : > { %427 = vst [vmem:[#allocation2 + $0x30] sm:$0xff] %v1434_v0 }
  0x24   : > { %428 = vst [vmem:[#allocation2] sm:$0xff] %v1434_v0 }
  0x25   : > { %429 = vst [vmem:[#allocation2 + $0x18] sm:$0xff] %v1434_v0 }
  0x26   : > { %430 = vst [vmem:[#allocation2 + $0x10] sm:$0xff] %v1434_v0 }
  0x27   : > { %431 = vst [vmem:[#allocation2 + $0x8] sm:$0xff] %v1434_v0 }
  0x28   : > { %432 = vst [vmem:[#allocation2 + $0x20] sm:$0xff] %v1434_v0 }
  0x29   : > { %433 = vst [vmem:[#allocation2 + $0x28] sm:$0xff] %v1434_v0 }
  0x2a   : > { %434 = vst [vmem:[#allocation2 + $0x38] sm:$0xff] %v1434_v0 }
  0x2b PF: > { %v468_v1 = vld [vmem:[%s1845_s5] sm:$0xf]  ;;  %vm518_vm0 = vcmask 1043456   ;;  %v463_v2 = vld [vmem:[%s1565_s26 + $0x58] sm:$0xff]  ;;  %vm469_vm1 = vcmask 31744   ;;  %vm587_vm2 = vcmask 64512  }
  0x2c   : > { %v451_v3 = vld [vmem:[%s1844_s4] sm:$0xff]  ;;  %1251 = vmatpush.msk.msra.mxu3 %vm518_vm0, %v468_v1  ;;  %1185 = vmatpush.msk.msra.mxu0 %vm518_vm0, %v468_v1  ;;  %v453_v7 = vld [vmem:[%s1565_s26 + $0x8] sm:$0xff]  ;;  %v454_v10 = vld [vmem:[%s1565_s26 + $0x10] sm:$0xff]  ;;  %p1234_p13 = scmp.ne.s32.totalorder %s1520_s21, 2 }
  0x2d   : > { %v452_v4 = vld [vmem:[%s1565_s26] sm:$0xff]  ;;  %1197 = vmatmul.msk.f32.vlgmr.msra.gmra.mxu3 %vm469_vm1, %v463_v2  ;;  %651 = vmatpush.msra.mxu1 %v451_v3  ;;  %v436_v8 = vld [vmem:[%s1560_s22 + $0x8] sm:$0xff]  ;;  %v437_v11 = vld [vmem:[%s1560_s22 + $0x10] sm:$0xff] }
  0x2e   : > { %v435_v5 = vld [vmem:[%s1560_s22] sm:$0xff]  ;;  %1252 = vmatpush.msrb.mxu3 %v451_v3  ;;  %1186 = vmatmul.msk.f32.vlgmr.msra.gmra.mxu0 %vm469_vm1, %v452_v4  ;;  %v465_v9 = vld [vmem:[%s1565_s26 + $0x68] sm:$0xff]  ;;  %v466_v12 = vld [vmem:[%s1565_s26 + $0x70] sm:$0xff] }
  0x2f   : > { %1202 = vmatmul.msk.f32.vlgmr.msra.gmra.mxu1 %vm587_vm2, %v435_v5  ;;  %v464_v6 = vld [vmem:[%s1565_s26 + $0x60] sm:$0xff]  ;;  %v455_v13 = vld [vmem:[%s1565_s26 + $0x18] sm:$0xff]  ;;  %v457_v19 = vld [vmem:[%s1565_s26 + $0x28] sm:$0xff] }
  0x30   : > { %v438_v14 = vld [vmem:[%s1560_s22 + $0x18] sm:$0xff]  ;;  %v456_v16 = vld [vmem:[%s1565_s26 + $0x20] sm:$0xff]  ;;  %v440_v20 = vld [vmem:[%s1560_s22 + $0x28] sm:$0xff] }
  0x31   : > { %v467_v15 = vld [vmem:[%s1565_s26 + $0x78] sm:$0xff]  ;;  %v439_v17 = vld [vmem:[%s1560_s22 + $0x20] sm:$0xff]  ;;  %v458_v22 = vld [vmem:[%s1565_s26 + $0x30] sm:$0xff] }
  0x32   : > { %v446_v18 = vld [vmem:[%s1560_s22 + $0x58] sm:$0xff]  ;;  %v447_v21 = vld [vmem:[%s1560_s22 + $0x60] sm:$0xff]  ;;  %v441_v23 = vld [vmem:[%s1560_s22 + $0x30] sm:$0xff] }
  0x33   : > { %v448_v24 = vld [vmem:[%s1560_s22 + $0x68] sm:$0xff]  ;;  %v459_v25 = vld [vmem:[%s1565_s26 + $0x38] sm:$0xff]  ;;  %v449_v27 = vld [vmem:[%s1560_s22 + $0x70] sm:$0xff] }
  0x34   : > { %v442_v26 = vld [vmem:[%s1560_s22 + $0x38] sm:$0xff]  ;;  %v460_v28 = vld [vmem:[%s1565_s26 + $0x40] sm:$0xff]  ;;  %v461_v31 = vld [vmem:[%s1565_s26 + $0x48] sm:$0xff] }
  0x35   : > { %1198 = vmatmul.msk.f32.gmra.mxu3 %vm469_vm1, %v464_v6  ;;  %v443_v29 = vld [vmem:[%s1560_s22 + $0x40] sm:$0xff]  ;;  %v450_v30 = vld [vmem:[%s1560_s22 + $0x78] sm:$0xff]  ;;  %v444_v32 = vld [vmem:[%s1560_s22 + $0x48] sm:$0xff] }
  0x36   : > { %1187 = vmatmul.msk.f32.gmra.mxu0 %vm469_vm1, %v453_v7  ;;  %v462_v33 = vld [vmem:[%s1565_s26 + $0x50] sm:$0xff]  ;;  %v1647_v36 = vld [vmem:[%s1846_s6] ss:$0 sm:$0xff] }
  0x37   : > { %1203 = vmatmul.msk.f32.gmra.mxu1 %vm587_vm2, %v436_v8  ;;  %v445_v34 = vld [vmem:[%s1560_s22 + $0x50] sm:$0xff] }
  0x3d   : > { %1199 = vmatmul.msk.f32.gmra.mxu3 %vm469_vm1, %v465_v9 }
  0x3e   : > { %1188 = vmatmul.msk.f32.gmra.mxu0 %vm469_vm1, %v454_v10 }
  0x3f   : > { %1204 = vmatmul.msk.f32.gmra.mxu1 %vm587_vm2, %v437_v11 }
  0x45   : > { %1200 = vmatmul.msk.f32.gmra.mxu3 %vm469_vm1, %v466_v12 }
  0x46   : > { %1189 = vmatmul.msk.f32.gmra.mxu0 %vm469_vm1, %v455_v13 }
  0x47   : > { %1205 = vmatmul.msk.f32.gmra.mxu1 %vm587_vm2, %v438_v14 }
  0x4d   : > { %1201 = vmatmul.msk.f32.gmra.mxu3 %vm469_vm1, %v467_v15 }
  0x4e   : > { %1190 = vmatmul.msk.f32.gmra.mxu0 %vm469_vm1, %v456_v16 }
  0x4f   : > { %1206 = vmatmul.msk.f32.gmra.mxu1 %vm587_vm2, %v439_v17 }
  0x55   : > { %1213 = vmatmul.msk.f32.vlgmr.msrb.gmra.mxu3 %vm587_vm2, %v446_v18 }
  0x56   : > { %1191 = vmatmul.msk.f32.gmra.mxu0 %vm469_vm1, %v457_v19 }
  0x57   : > { %1207 = vmatmul.msk.f32.gmra.mxu1 %vm587_vm2, %v440_v20 }
  0x5d   : > { %1214 = vmatmul.msk.f32.gmra.mxu3 %vm587_vm2, %v447_v21 }
  0x5e   : > { %1192 = vmatmul.msk.f32.gmra.mxu0 %vm469_vm1, %v458_v22 }
  0x5f   : > { %1208 = vmatmul.msk.f32.gmra.mxu1 %vm587_vm2, %v441_v23 }
  0x65   : > { %1215 = vmatmul.msk.f32.gmra.mxu3 %vm587_vm2, %v448_v24 }
  0x66   : > { %1193 = vmatmul.msk.f32.gmra.mxu0 %vm469_vm1, %v459_v25 }
  0x67   : > { %1209 = vmatmul.msk.f32.gmra.mxu1 %vm587_vm2, %v442_v26 }
  0x6d   : > { %1216 = vmatmul.msk.f32.gmra.mxu3 %vm587_vm2, %v449_v27 }
  0x6e   : > { %1194 = vmatmul.msk.f32.gmra.mxu0 %vm469_vm1, %v460_v28 }
  0x6f   : > { %1210 = vmatmul.msk.f32.gmra.mxu1 %vm587_vm2, %v443_v29 }
  0x75   : > { %1217 = vmatmul.msk.f32.gmra.mxu3 %vm587_vm2, %v450_v30 }
  0x76   : > { %1195 = vmatmul.msk.f32.gmra.mxu0 %vm469_vm1, %v461_v31 }
  0x77   : > { %1211 = vmatmul.msk.f32.gmra.mxu1 %vm587_vm2, %v444_v32 }
  0x7e   : > { %1196 = vmatmul.msk.f32.gmra.mxu0 %vm469_vm1, %v462_v33 }
  0x7f   : > { %1212 = vmatmul.msk.f32.gmra.mxu1 %vm587_vm2, %v445_v34 }
  0xab   : > { %v539_v35 = vpop.f32.mrf.mxu0 }
  0xac   : > { %v653_v37 = vpop.f32.mrf.mxu1 }
  0xad   : > { %v654_v38 = vadd.f32 %v653_v37, %v539_v35 }
  0xaf   : > { %vm702_vm3 = vcmp.ge.f32.partialorder %v654_v38, 0.0  ;;  %v721_v39 = vmul.f32 %v1647_v36, %v654_v38 }
  0xb0   : > { %v572_v40 = vpop.f32.mrf.mxu3 }
  0xb1   : > { %v1650_v41 = vsel %vm702_vm3, %v654_v38, %v721_v39 }
  0xb2   : > { %753 = vst [vmem:[%s1571_s28] sm:$0xff] %v1650_v41 }
  0xb3   : > { %v542_v42 = vpop.f32.mrf.mxu0 }
  0xb4   : > { %v656_v43 = vpop.f32.mrf.mxu1 }
  0xb5   : > { %v657_v44 = vadd.f32 %v656_v43, %v542_v42 }
  0xb7   : > { %vm703_vm4 = vcmp.ge.f32.partialorder %v657_v44, 0.0  ;;  %v722_v45 = vmul.f32 %v1647_v36, %v657_v44 }
  0xb8   : > { %v575_v46 = vpop.f32.mrf.mxu3 }
  0xb9   : > { %v1655_v47 = vsel %vm703_vm4, %v657_v44, %v722_v45 }
  0xba   : > { %754 = vst [vmem:[%s1571_s28 + $0x8] sm:$0xff] %v1655_v47 }
  0xbb   : > { %v545_v48 = vpop.f32.mrf.mxu0 }
  0xbc   : > { %v659_v49 = vpop.f32.mrf.mxu1 }
  0xbd   : > { %v660_v50 = vadd.f32 %v659_v49, %v545_v48 }
  0xbf   : > { %vm704_vm5 = vcmp.ge.f32.partialorder %v660_v50, 0.0  ;;  %v723_v51 = vmul.f32 %v1647_v36, %v660_v50 }
  0xc0   : > { %v578_v52 = vpop.f32.mrf.mxu3 }
  0xc1   : > { %v1660_v53 = vsel %vm704_vm5, %v660_v50, %v723_v51 }
  0xc2   : > { %755 = vst [vmem:[%s1571_s28 + $0x10] sm:$0xff] %v1660_v53 }
  0xc3   : > { %v548_v54 = vpop.f32.mrf.mxu0 }
  0xc4   : > { %v662_v55 = vpop.f32.mrf.mxu1 }
  0xc5   : > { %v663_v56 = vadd.f32 %v662_v55, %v548_v54 }
  0xc7   : > { %vm705_vm6 = vcmp.ge.f32.partialorder %v663_v56, 0.0  ;;  %v724_v57 = vmul.f32 %v1647_v36, %v663_v56 }
  0xc8   : > { %v581_v58 = vpop.f32.mrf.mxu3 }
  0xc9   : > { %v1665_v59 = vsel %vm705_vm6, %v663_v56, %v724_v57  ;;  %v769_v56 = vlaneseq  ;;  %v1336_v57 = vld [vmem:[%s421_s29] ss:$0 sm:$0xff] }
  0xca   : > { %756 = vst [vmem:[%s1571_s28 + $0x18] sm:$0xff] %v1665_v59 }
  0xcb   : > { %v551_v60 = vpop.f32.mrf.mxu0 }
  0xcc   : > { %v665_v61 = vpop.f32.mrf.mxu1 }
  0xcd   : > { %v666_v62 = vadd.f32 %v665_v61, %v551_v60 }
  0xcf   : > { %vm706_vm7 = vcmp.ge.f32.partialorder %v666_v62, 0.0  ;;  %v725_v63 = vmul.f32 %v1647_v36, %v666_v62 }
  0xd0   : > { %v584_v0 = vpop.f32.mrf.mxu3 }
  0xd1   : > { %v1670_v1 = vsel %vm706_vm7, %v666_v62, %v725_v63  ;;  %v804_v63 = vld [vmem:[#allocation2 + $0x30] sm:$0xff] }
  0xd2   : > { %757 = vst [vmem:[%s1571_s28 + $0x20] sm:$0xff] %v1670_v1 }
  0xd3   : > { %v554_v2 = vpop.f32.mrf.mxu0 }
  0xd4   : > { %v668_v3 = vpop.f32.mrf.mxu1 }
  0xd5   : > { %v669_v4 = vadd.f32 %v668_v3, %v554_v2  ;;  %v805_v2 = vld [vmem:[#allocation2] sm:$0xff] }
  0xd7   : > { %vm707_vm8 = vcmp.ge.f32.partialorder %v669_v4, 0.0  ;;  %v726_v5 = vmul.f32 %v1647_v36, %v669_v4 }
  0xd8   : > { %v686_v6 = vpop.f32.mrf.mxu3 }
  0xd9   : > { %v687_v7 = vadd.f32 %v686_v6, %v572_v40  ;;  %v1675_v8 = vsel %vm707_vm8, %v669_v4, %v726_v5  ;;  %v806_v5 = vld [vmem:[#allocation2 + $0x18] sm:$0xff] }
  0xda   : > { %758 = vst [vmem:[%s1571_s28 + $0x28] sm:$0xff] %v1675_v8 }
  0xdb   : > { %v557_v9 = vpop.f32.mrf.mxu0  ;;  %vm713_vm9 = vcmp.ge.f32.partialorder %v687_v7, 0.0  ;;  %v732_v10 = vmul.f32 %v1647_v36, %v687_v7 }
  0xdc   : > { %v671_v11 = vpop.f32.mrf.mxu1 }
  0xdd   : > { %v672_v12 = vadd.f32 %v671_v11, %v557_v9  ;;  %v748_v13 = vsel %vm713_vm9, %v687_v7, %v732_v10  ;;  %v808_v11 = vld [vmem:[#allocation2 + $0x8] sm:$0xff] }
  0xde   : > { %764 = vst [vmem:[%s1571_s28 + $0x58] sm:$0xff] %v748_v13 }
  0xdf   : > { %vm708_vm10 = vcmp.ge.f32.partialorder %v672_v12, 0.0  ;;  %v727_v14 = vmul.f32 %v1647_v36, %v672_v12 }
  0xe0   : > { %v689_v15 = vpop.f32.mrf.mxu3 }
  0xe1   : > { %v690_v16 = vadd.f32 %v689_v15, %v575_v46  ;;  %v743_v17 = vsel %vm708_vm10, %v672_v12, %v727_v14  ;;  %v809_v14 = vld [vmem:[#allocation2 + $0x20] sm:$0xff] }
  0xe2   : > { %759 = vst [vmem:[%s1571_s28 + $0x30] sm:$0xff] %v743_v17 }
  0xe3   : > { %v560_v18 = vpop.f32.mrf.mxu0  ;;  %vm714_vm11 = vcmp.ge.f32.partialorder %v690_v16, 0.0  ;;  %v733_v19 = vmul.f32 %v1647_v36, %v690_v16 }
  0xe4   : > { %v674_v20 = vpop.f32.mrf.mxu1 }
  0xe5   : > { %v675_v21 = vadd.f32 %v674_v20, %v560_v18  ;;  %v749_v22 = vsel %vm714_vm11, %v690_v16, %v733_v19  ;;  %v811_v20 = vld [vmem:[#allocation2 + $0x38] sm:$0xff] }
  0xe6   : > { %765 = vst [vmem:[%s1571_s28 + $0x60] sm:$0xff] %v749_v22 }
  0xe7   : > { %vm709_vm12 = vcmp.ge.f32.partialorder %v675_v21, 0.0  ;;  %v728_v23 = vmul.f32 %v1647_v36, %v675_v21 }
  0xe8   : > { %v692_v24 = vpop.f32.mrf.mxu3 }
  0xe9   : > { %v693_v25 = vadd.f32 %v692_v24, %v578_v52  ;;  %v744_v26 = vsel %vm709_vm12, %v675_v21, %v728_v23 }
  0xea   : > { %760 = vst [vmem:[%s1571_s28 + $0x38] sm:$0xff] %v744_v26 }
  0xeb   : > { %v563_v27 = vpop.f32.mrf.mxu0  ;;  %vm715_vm13 = vcmp.ge.f32.partialorder %v693_v25, 0.0  ;;  %v734_v28 = vmul.f32 %v1647_v36, %v693_v25 }
  0xec   : > { %v677_v29 = vpop.f32.mrf.mxu1 }
  0xed   : > { %v678_v30 = vadd.f32 %v677_v29, %v563_v27  ;;  %v750_v31 = vsel %vm715_vm13, %v693_v25, %v734_v28 }
  0xee   : > { %766 = vst [vmem:[%s1571_s28 + $0x68] sm:$0xff] %v750_v31 }
  0xef   : > { %vm710_vm14 = vcmp.ge.f32.partialorder %v678_v30, 0.0  ;;  %v729_v32 = vmul.f32 %v1647_v36, %v678_v30 }
  0xf0   : > { %v695_v33 = vpop.f32.mrf.mxu3 }
  0xf1   : > { %v696_v34 = vadd.f32 %v695_v33, %v581_v58  ;;  %v745_v35 = vsel %vm710_vm14, %v678_v30, %v729_v32  ;;  %v1435_v58 = vmov 1.0  }
  0xf2   : > { %761 = vst [vmem:[%s1571_s28 + $0x40] sm:$0xff] %v745_v35 }
  0xf3   : > { %v566_v37 = vpop.f32.mrf.mxu0  ;;  %vm716_vm15 = vcmp.ge.f32.partialorder %v696_v34, 0.0  ;;  %v735_v38 = vmul.f32 %v1647_v36, %v696_v34 }
  0xf4   : > { %v680_v39 = vpop.f32.mrf.mxu1 }
  0xf5   : > { %v681_v40 = vadd.f32 %v680_v39, %v566_v37  ;;  %v751_v42 = vsel %vm716_vm15, %v696_v34, %v735_v38 }
  0xf6   : > { %767 = vst [vmem:[%s1571_s28 + $0x70] sm:$0xff] %v751_v42 }
  0xf7   : > { %vm711_vm0 = vcmp.ge.f32.partialorder %v681_v40, 0.0  ;;  %v730_v43 = vmul.f32 %v1647_v36, %v681_v40 }
  0xf8   : > { %v698_v44 = vpop.f32.mrf.mxu3 }
  0xf9   : > { %v699_v45 = vadd.f32 %v698_v44, %v584_v0  ;;  %v746_v46 = vsel %vm711_vm0, %v681_v40, %v730_v43 }
  0xfa   : > { %762 = vst [vmem:[%s1571_s28 + $0x48] sm:$0xff] %v746_v46 }
  0xfb   : > { %vm717_vm1 = vcmp.ge.f32.partialorder %v699_v45, 0.0  ;;  %v736_v48 = vmul.f32 %v1647_v36, %v699_v45  ;;  %v569_v49 = vpop.f32.mrf.mxu0 }
  0xfc   : > { %v683_v50 = vpop.f32.mrf.mxu1 }
  0xfd   : > { %v752_v51 = vsel %vm717_vm1, %v699_v45, %v736_v48  ;;  %v684_v52 = vadd.f32 %v683_v50, %v569_v49 }
  0xfe   : > { %768 = vst [vmem:[%s1571_s28 + $0x78] sm:$0xff] %v752_v51  ;;  %812 = vmatpush.msra.mxu2 %v752_v51 }
  0xff   : > { %vm712_vm3 = vcmp.ge.f32.partialorder %v684_v52, 0.0  ;;  %v731_v54 = vmul.f32 %v1647_v36, %v684_v52  ;;  %v770_v36 = vshrl.u32 %v769_v56, 7 }
 0x100   : > { %813 = vmatpush.msra.mxu2 %v751_v42 }
 0x101   : > { %v747_v55 = vsel %vm712_vm3, %v684_v52, %v731_v54  ;;  %vm780_vm4 = vcmp.eq.s32.totalorder %v770_v36, %v1336_v57  ;;  %v771_v60 = vadd.s32 8, %v770_v36  ;;  %v772_v61 = vadd.s32 16, %v770_v36 }
 0x102   : > { %814 = vmatpush.msra.mxu2 %v750_v31  ;;  %763 = vst [vmem:[%s1571_s28 + $0x50] sm:$0xff] %v747_v55  ;;  %v774_v62 = vadd.s32 32, %v770_v36 }
 0x103   : > { %vm781_vm5 = vcmp.eq.s32.totalorder %v771_v60, %v1336_v57  ;;  %vm782_vm6 = vcmp.eq.s32.totalorder %v772_v61, %v1336_v57 }
 0x104   : > { %815 = vmatpush.msra.mxu2 %v749_v22  ;;  %vm784_vm8 = vcmp.eq.s32.totalorder %v774_v62, %v1336_v57 }
 0x106   : > { %816 = vmatpush.msra.mxu2 %v748_v13 }
 0x108   : > { %817 = vmatpush.msra.mxu2 %v747_v55 }
 0x10a   : > { %818 = vmatpush.msra.mxu2 %v746_v46 }
 0x10c   : > { %819 = vmatpush.msra.mxu2 %v745_v35 }
 0x10e   : > { %820 = vmatpush.msra.mxu2 %v744_v26 }
 0x110   : > { %821 = vmatpush.msra.mxu2 %v743_v17  ;;  %v810_v17 = vld [vmem:[#allocation2 + $0x28] sm:$0xff] }
 0x112   : > { %822 = vmatpush.msra.mxu2 %v1675_v8  ;;  %v807_v8 = vld [vmem:[#allocation2 + $0x10] sm:$0xff] }
 0x114   : > { %823 = vmatpush.msra.mxu2 %v1670_v1 }
 0x116   : > { %824 = vmatpush.msra.mxu2 %v1665_v59  ;;  %v773_v59 = vadd.s32 24, %v770_v36 }
 0x118   : > { %825 = vmatpush.msra.mxu2 %v1660_v53  ;;  %vm783_vm7 = vcmp.eq.s32.totalorder %v773_v59, %v1336_v57  ;;  %v775_v53 = vadd.s32 40, %v770_v36 }
 0x11a   : > { %826 = vmatpush.msra.mxu2 %v1655_v47  ;;  %vm785_vm9 = vcmp.eq.s32.totalorder %v775_v53, %v1336_v57  ;;  %v776_v47 = vadd.s32 48, %v770_v36 }
 0x11c   : > { %827 = vmatpush.msra.mxu2 %v1650_v41  ;;  %vm786_vm10 = vcmp.eq.s32.totalorder %v776_v47, %v1336_v57  ;;  %v777_v41 = vadd.s32 56, %v770_v36 }
 0x11d   : > { %1226 = vmatmul.msk.f32.vlgmr.msra.gmra.mxu2 %vm780_vm4, %v1435_v58 }
 0x11e   : > { %vm787_vm11 = vcmp.eq.s32.totalorder %v777_v41, %v1336_v57 }
 0x125   : > { %1227 = vmatmul.msk.f32.gmra.mxu2 %vm781_vm5, %v1435_v58 }
 0x12d   : > { %1228 = vmatmul.msk.f32.gmra.mxu2 %vm782_vm6, %v1435_v58 }
 0x135   : > { %1229 = vmatmul.msk.f32.gmra.mxu2 %vm783_vm7, %v1435_v58 }
 0x13d   : > { %1230 = vmatmul.msk.f32.gmra.mxu2 %vm784_vm8, %v1435_v58 }
 0x145   : > { %1231 = vmatmul.msk.f32.gmra.mxu2 %vm785_vm9, %v1435_v58 }
 0x14d   : > { %1232 = vmatmul.msk.f32.gmra.mxu2 %vm786_vm10, %v1435_v58 }
 0x155   : > { %1233 = vmatmul.msk.f32.gmra.mxu2 %vm787_vm11, %v1435_v58 }
 0x1a0   : > { %v829_v0 = vpop.f32.mrf.mxu2 }
 0x1a1   : > { %v853_v1 = vadd.f32 %v829_v0, %v804_v63 }
 0x1a3   : > { %861 = vst [vmem:[#allocation2 + $0x30] sm:$0xff] %v853_v1 }
 0x1a8   : > { %v832_v3 = vpop.f32.mrf.mxu2 }
 0x1a9   : > { %v854_v4 = vadd.f32 %v832_v3, %v805_v2 }
 0x1ab   : > { %862 = vst [vmem:[#allocation2] sm:$0xff] %v854_v4 }
 0x1b0   : > { %v835_v6 = vpop.f32.mrf.mxu2 }
 0x1b1   : > { %v855_v7 = vadd.f32 %v835_v6, %v806_v5 }
 0x1b3   : > { %863 = vst [vmem:[#allocation2 + $0x18] sm:$0xff] %v855_v7 }
 0x1b8   : > { %v838_v9 = vpop.f32.mrf.mxu2 }
 0x1b9   : > { %v856_v10 = vadd.f32 %v838_v9, %v807_v8 }
 0x1bb   : > { %864 = vst [vmem:[#allocation2 + $0x10] sm:$0xff] %v856_v10 }
 0x1c0   : > { %v841_v12 = vpop.f32.mrf.mxu2 }
 0x1c1   : > { %v857_v13 = vadd.f32 %v841_v12, %v808_v11 }
 0x1c3   : > { %865 = vst [vmem:[#allocation2 + $0x8] sm:$0xff] %v857_v13 }
 0x1c8   : > { %v844_v15 = vpop.f32.mrf.mxu2 }
 0x1c9   : > { %v858_v16 = vadd.f32 %v844_v15, %v809_v14 }
 0x1cb   : > { %866 = vst [vmem:[#allocation2 + $0x20] sm:$0xff] %v858_v16 }
 0x1d0   : > { %v847_v18 = vpop.f32.mrf.mxu2 }
 0x1d1   : > { %v859_v19 = vadd.f32 %v847_v18, %v810_v17 }
 0x1d3   : > { %867 = vst [vmem:[#allocation2 + $0x28] sm:$0xff] %v859_v19 }
 0x1d7   : > { %872 = sbr.rel (%p1234_p13) target bundleno = 666 (0x29a), region = 68 }
 0x1d8   : > { %v850_v21 = vpop.f32.mrf.mxu2 }
 0x1d9   : > { %v860_v22 = vadd.f32 %v850_v21, %v811_v20 }
 0x1db   : > { %868 = vst [vmem:[#allocation2 + $0x38] sm:$0xff] %v860_v22 }
 0x1dc   : > { %v905_v23 = vld [vmem:[%s1848_s8] sm:$0xff]  ;;  %v896_v24 = vld [vmem:[%s1847_s7 + $0x78] sm:$0xff]  ;;  %v895_v26 = vld [vmem:[%s1847_s7 + $0x70] sm:$0xff] }
 0x1dd   : > { %v897_v25 = vld [vmem:[%s1843_s3] sm:$0xff]  ;;  %945 = vmatpush.msra.mxu0 %v905_v23  ;;  %971 = vmatpush.msra.mxu1 %v896_v24  ;;  %v894_v27 = vld [vmem:[%s1847_s7 + $0x68] sm:$0xff]  ;;  %v892_v29 = vld [vmem:[%s1847_s7 + $0x58] sm:$0xff] }
 0x1de   : > { %1253 = vmatpush.msra.mxu2 %v896_v24  ;;  %1235 = vmatmul.msk.f32.vlgmr.msra.gmra.mxu0 %vm587_vm2, %v897_v25  ;;  %v893_v28 = vld [vmem:[%s1847_s7 + $0x60] sm:$0xff]  ;;  %v898_v30 = vld [vmem:[%s1843_s3 + $0x8] sm:$0xff]  ;;  %v891_v31 = vld [vmem:[%s1847_s7 + $0x50] sm:$0xff] }
 0x1df   : > { %972 = vmatpush.msra.mxu1 %v895_v26  ;;  %1254 = vmatpush.msra.mxu3 %v896_v24  ;;  %v890_v32 = vld [vmem:[%s1847_s7 + $0x48] sm:$0xff]  ;;  %v889_v33 = vld [vmem:[%s1847_s7 + $0x40] sm:$0xff]  ;;  %v888_v34 = vld [vmem:[%s1847_s7 + $0x38] sm:$0xff] }
 0x1e0   : > { %1255 = vmatpush.msra.mxu2 %v895_v26  ;;  %v899_v35 = vld [vmem:[%s1843_s3 + $0x10] sm:$0xff]  ;;  %v886_v38 = vld [vmem:[%s1847_s7 + $0x28] sm:$0xff]  ;;  %v885_v39 = vld [vmem:[%s1847_s7 + $0x20] sm:$0xff] }
 0x1e1   : > { %973 = vmatpush.msra.mxu1 %v894_v27  ;;  %1256 = vmatpush.msra.mxu3 %v895_v26  ;;  %v887_v37 = vld [vmem:[%s1847_s7 + $0x30] sm:$0xff]  ;;  %v884_v40 = vld [vmem:[%s1847_s7 + $0x18] sm:$0xff]  ;;  %v882_v44 = vld [vmem:[%s1847_s7 + $0x8] sm:$0xff] }
 0x1e2   : > { %1257 = vmatpush.msra.mxu2 %v894_v27  ;;  %v900_v42 = vld [vmem:[%s1843_s3 + $0x18] sm:$0xff]  ;;  %v883_v43 = vld [vmem:[%s1847_s7 + $0x10] sm:$0xff]  ;;  %v881_v45 = vld [vmem:[%s1847_s7] sm:$0xff] }
 0x1e3   : > { %974 = vmatpush.msra.mxu1 %v893_v28  ;;  %1258 = vmatpush.msra.mxu3 %v894_v27  ;;  %v873_v46 = vld [vmem:[#allocation2 + $0x30] sm:$0xff]  ;;  %v875_v48 = vld [vmem:[#allocation2 + $0x18] sm:$0xff]  ;;  %v901_v49 = vld [vmem:[%s1843_s3 + $0x20] sm:$0xff] }
 0x1e4   : > { %1259 = vmatpush.msra.mxu2 %v893_v28  ;;  %v878_v50 = vld [vmem:[#allocation2 + $0x20] sm:$0xff]  ;;  %v876_v52 = vld [vmem:[#allocation2 + $0x10] sm:$0xff]  ;;  %v902_v54 = vld [vmem:[%s1843_s3 + $0x28] sm:$0xff] }
 0x1e5   : > { %975 = vmatpush.msra.mxu1 %v892_v29  ;;  %1260 = vmatpush.msra.mxu3 %v893_v28  ;;  %v874_v51 = vld [vmem:[#allocation2] sm:$0xff]  ;;  %v879_v55 = vld [vmem:[#allocation2 + $0x28] sm:$0xff]  ;;  %v903_v36 = vld [vmem:[%s1843_s3 + $0x30] sm:$0xff] }
 0x1e6   : > { %1261 = vmatpush.msra.mxu2 %v892_v29  ;;  %1236 = vmatmul.msk.f32.gmra.mxu0 %vm587_vm2, %v898_v30  ;;  %v877_v56 = vld [vmem:[#allocation2 + $0x8] sm:$0xff]  ;;  %v880_v57 = vld [vmem:[#allocation2 + $0x38] sm:$0xff]  ;;  %v1337_v53 = vld [vmem:[%s1849_s9] ss:$0 sm:$0xff] }
 0x1e7   : > { %976 = vmatpush.msra.mxu1 %v891_v31  ;;  %1262 = vmatpush.msra.mxu3 %v892_v29  ;;  %v904_v58 = vld [vmem:[%s1843_s3 + $0x38] sm:$0xff] }
 0x1e8   : > { %1263 = vmatpush.msra.mxu2 %v891_v31 }
 0x1e9   : > { %977 = vmatpush.msra.mxu1 %v890_v32  ;;  %1264 = vmatpush.msra.mxu3 %v891_v31 }
 0x1ea   : > { %1265 = vmatpush.msra.mxu2 %v890_v32 }
 0x1eb   : > { %978 = vmatpush.msra.mxu1 %v889_v33  ;;  %1266 = vmatpush.msra.mxu3 %v890_v32 }
 0x1ec   : > { %1267 = vmatpush.msra.mxu2 %v889_v33 }
 0x1ed   : > { %979 = vmatpush.msra.mxu1 %v888_v34  ;;  %1268 = vmatpush.msra.mxu3 %v889_v33 }
 0x1ee   : > { %1269 = vmatpush.msra.mxu2 %v888_v34  ;;  %1237 = vmatmul.msk.f32.gmra.mxu0 %vm587_vm2, %v899_v35 }
 0x1ef   : > { %980 = vmatpush.msra.mxu1 %v887_v37  ;;  %1270 = vmatpush.msra.mxu3 %v888_v34 }
 0x1f0   : > { %1271 = vmatpush.msra.mxu2 %v887_v37 }
 0x1f1   : > { %981 = vmatpush.msra.mxu1 %v886_v38  ;;  %1272 = vmatpush.msra.mxu3 %v887_v37 }
 0x1f2   : > { %1273 = vmatpush.msra.mxu2 %v886_v38 }
 0x1f3   : > { %982 = vmatpush.msra.mxu1 %v885_v39  ;;  %1274 = vmatpush.msra.mxu3 %v886_v38 }
 0x1f4   : > { %1275 = vmatpush.msra.mxu2 %v885_v39 }
 0x1f5   : > { %983 = vmatpush.msra.mxu1 %v884_v40  ;;  %1276 = vmatpush.msra.mxu3 %v885_v39 }
 0x1f6   : > { %1277 = vmatpush.msra.mxu2 %v884_v40  ;;  %1238 = vmatmul.msk.f32.gmra.mxu0 %vm587_vm2, %v900_v42 }
 0x1f7   : > { %984 = vmatpush.msra.mxu1 %v883_v43  ;;  %1278 = vmatpush.msra.mxu3 %v884_v40 }
 0x1f8   : > { %1279 = vmatpush.msra.mxu2 %v883_v43 }
 0x1f9   : > { %985 = vmatpush.msra.mxu1 %v882_v44  ;;  %1280 = vmatpush.msra.mxu3 %v883_v43 }
 0x1fa   : > { %1281 = vmatpush.msra.mxu2 %v882_v44 }
 0x1fb   : > { %986 = vmatpush.msra.mxu1 %v881_v45  ;;  %1282 = vmatpush.msra.mxu3 %v882_v44 }
 0x1fc   : > { %1283 = vmatpush.msra.mxu2 %v881_v45  ;;  %987 = vmatmul.f32.vlgmr.msra.gmra.mxu1 %v873_v46 }
 0x1fd   : > { %993 = vmatmul.f32.vlgmr.msra.gmra.mxu2 %v875_v48  ;;  %1284 = vmatpush.msra.mxu3 %v881_v45 }
 0x1fe   : > { %1239 = vmatmul.msk.f32.gmra.mxu0 %vm587_vm2, %v901_v49  ;;  %1002 = vmatmul.f32.vlgmr.msra.gmra.mxu3 %v878_v50 }
 0x204   : > { %990 = vmatmul.f32.gmra.mxu1 %v874_v51 }
 0x205   : > { %996 = vmatmul.f32.gmra.mxu2 %v876_v52 }
 0x206   : > { %1240 = vmatmul.msk.f32.gmra.mxu0 %vm587_vm2, %v902_v54  ;;  %1005 = vmatmul.f32.gmra.mxu3 %v879_v55 }
 0x20d   : > { %999 = vmatmul.f32.gmra.mxu2 %v877_v56 }
 0x20e   : > { %1241 = vmatmul.msk.f32.gmra.mxu0 %vm587_vm2, %v903_v36  ;;  %1008 = vmatmul.f32.gmra.mxu3 %v880_v57 }
 0x216   : > { %1242 = vmatmul.msk.f32.gmra.mxu0 %vm587_vm2, %v904_v58 }
 0x25b   : > { %v947_v60 = vpop.f32.mrf.mxu0 }
 0x263   : > { %v950_v61 = vpop.f32.mrf.mxu0 }
 0x26b   : > { %v953_v59 = vpop.f32.mrf.mxu0 }
 0x273   : > { %v956_v62 = vpop.f32.mrf.mxu0 }
 0x279   : > { %v988_v47 = vpop.f32.mrf.mxu1 }
 0x27a   : > { %v989_v41 = vadd.f32 %v988_v47, %v947_v60 }
 0x27b   : > { %v959_v63 = vpop.f32.mrf.mxu0 }
 0x27c   : > { %vm1013_vm12 = vcmp.ge.f32.partialorder %v989_v41, 0.0  ;;  %v1024_v0 = vmul.f32 %v1337_v53, %v989_v41 }
 0x27e   : > { %v1032_v1 = vsel %vm1013_vm12, %v989_v41, %v1024_v0 }
 0x27f   : > { %1040 = vst [vmem:[#allocation3] sm:$0xff] %v1032_v1 }
 0x280   : > { %v994_v2 = vpop.f32.mrf.mxu2 }
 0x281   : > { %v995_v3 = vadd.f32 %v994_v2, %v953_v59  ;;  %v991_v4 = vpop.f32.mrf.mxu1  ;;  %v1003_v5 = vpop.f32.mrf.mxu3 }
 0x282   : > { %v992_v6 = vadd.f32 %v991_v4, %v950_v61 }
 0x283   : > { %vm1015_vm2 = vcmp.ge.f32.partialorder %v995_v3, 0.0  ;;  %v1026_v7 = vmul.f32 %v1337_v53, %v995_v3  ;;  %v962_v8 = vpop.f32.mrf.mxu0 }
 0x284   : > { %vm1014_vm13 = vcmp.ge.f32.partialorder %v992_v6, 0.0  ;;  %v1025_v9 = vmul.f32 %v1337_v53, %v992_v6  ;;  %v1004_v10 = vadd.f32 %v1003_v5, %v962_v8 }
 0x285   : > { %v1034_v11 = vsel %vm1015_vm2, %v995_v3, %v1026_v7 }
 0x286   : > { %1042 = vst [vmem:[#allocation3 + $0x10] sm:$0xff] %v1034_v11  ;;  %v1033_v12 = vsel %vm1014_vm13, %v992_v6, %v1025_v9  ;;  %vm1018_vm14 = vcmp.ge.f32.partialorder %v1004_v10, 0.0  ;;  %v1029_v13 = vmul.f32 %v1337_v53, %v1004_v10 }
 0x287   : > { %1041 = vst [vmem:[#allocation3 + $0x8] sm:$0xff] %v1033_v12 }
 0x288   : > { %v1037_v14 = vsel %vm1018_vm14, %v1004_v10, %v1029_v13  ;;  %v997_v15 = vpop.f32.mrf.mxu2 }
 0x289   : > { %1045 = vst [vmem:[#allocation3 + $0x28] sm:$0xff] %v1037_v14  ;;  %v998_v16 = vadd.f32 %v997_v15, %v956_v62  ;;  %v1006_v17 = vpop.f32.mrf.mxu3 }
 0x28b   : > { %vm1016_vm15 = vcmp.ge.f32.partialorder %v998_v16, 0.0  ;;  %v1027_v18 = vmul.f32 %v1337_v53, %v998_v16  ;;  %v965_v19 = vpop.f32.mrf.mxu0 }
 0x28c   : > { %v1007_v20 = vadd.f32 %v1006_v17, %v965_v19 }
 0x28d   : > { %v1035_v21 = vsel %vm1016_vm15, %v998_v16, %v1027_v18 }
 0x28e   : > { %1043 = vst [vmem:[#allocation3 + $0x18] sm:$0xff] %v1035_v21  ;;  %vm1019_vm0 = vcmp.ge.f32.partialorder %v1007_v20, 0.0  ;;  %v1030_v22 = vmul.f32 %v1337_v53, %v1007_v20 }
 0x290   : > { %v1038_v23 = vsel %vm1019_vm0, %v1007_v20, %v1030_v22  ;;  %v1000_v24 = vpop.f32.mrf.mxu2 }
 0x291   : > { %1046 = vst [vmem:[#allocation3 + $0x30] sm:$0xff] %v1038_v23  ;;  %v1001_v25 = vadd.f32 %v1000_v24, %v959_v63  ;;  %v1009_v26 = vpop.f32.mrf.mxu3 }
 0x293   : > { %vm1017_vm1 = vcmp.ge.f32.partialorder %v1001_v25, 0.0  ;;  %v1028_v27 = vmul.f32 %v1337_v53, %v1001_v25  ;;  %v968_v28 = vpop.f32.mrf.mxu0 }
 0x294   : > { %v1010_v29 = vadd.f32 %v1009_v26, %v968_v28 }
 0x295   : > { %v1036_v30 = vsel %vm1017_vm1, %v1001_v25, %v1028_v27 }
 0x296   : > { %1044 = vst [vmem:[#allocation3 + $0x20] sm:$0xff] %v1036_v30  ;;  %vm1020_vm3 = vcmp.ge.f32.partialorder %v1010_v29, 0.0  ;;  %v1031_v31 = vmul.f32 %v1337_v53, %v1010_v29 }
 0x298   : > { %v1039_v32 = vsel %vm1020_vm3, %v1010_v29, %v1031_v31 }
 0x299   : > { %1047 = vst [vmem:[#allocation3 + $0x38] sm:$0xff] %v1039_v32 }
 0x29a PF: > { %s1060_s22 = sshll.u32 %s1850_s10, 4  ;;  %s1436_s24 = smov [#allocation3]   ;;  %s1061_s22 = int_to_ptr.hbm [resolvable:$true] %s1060_s22 }
 0x29b   : > { %s1058_s25 = sshll.u32 %s1436_s24, 4  ;;  %s1437_s30 = smov 128   ;;  %s1059_s25 = int_to_ptr.vmem [resolvable:$true] %s1058_s25 }
 0x29c   : > { %s1438_s14 = smov 8   ;;  %s1250_s19 = sshll.u32 %s1520_s21, 7 }
 0x29d   : > { %1286 = dma.vmem_to_hbm [thread:$0]  (%p290_p2), %s1059_s25, 1024, %s1061_s22, [#allocation4], %s1437_s30, %s1437_s30, %s1438_s14  }
 0x29e   : > { %s1075_s23 = sshll.u32 %s1571_s28, 4  ;;  %s1074_s26 = scalar_lea.hbm %s1851_s11, %s1250_s19  ;;  %s1076_s23 = int_to_ptr.vmem [resolvable:$true] %s1075_s23 }
 0x29f   : > { %s1077_s16 = sshll.u32 %s1074_s26, 4  ;;  %s1870_s29 = sand.u32 1, %s1424_s18   ;;  %s1078_s16 = int_to_ptr.hbm [resolvable:$true] %s1077_s16 }
 0x2a0   : > { %s1049_s13 = scalar_lea.sflag [#allocation6], %s1870_s29  ;;  %s1380_s0 = sshra.s32 %s1078_s16, 4  ;;  %s1381_s0 = int_to_ptr.hbm [resolvable:$true] %s1380_s0 }
 0x2a1   : > { %s1382_s24 = scalar_lea.hbm %s1381_s0, 128  ;;  %s1386_s28 = scalar_lea.hbm %s1851_s11, 384 }
 0x2a2   : > { %p1383_p0 = scmp.ne.s32.totalorder %s1381_s0, %s1382_s24  ;;  %p1387_p4 = scmp.lt.s32.totalorder %s1381_s0, %s1851_s11 }
 0x2a3   : > { %p1388_p7 = scmp.lt.s32.totalorder %s1386_s28, %s1382_s24 }
 0x2a4   : > { %p1384_p1 = pnand %p1383_p0, %p1539_p5 }
 0x2a5   : > { %p1389_p8 = por %p1388_p7, %p1387_p4 }
 0x2a6   : > { %p1385_p3 = pneg %p1384_p1 }
 0x2a8   : > { %p1390_p9 = pnand %p1389_p8, %p1385_p3 }
 0x2aa   : > { %1393 = shalt.err (!%p1390_p9)
}
 0x2ab   : > { %1287 = dma.vmem_to_hbm [thread:$0]  (%p1539_p5), %s1076_s23, 2048, %s1078_s16, %s1049_s13, %s1437_s30, %s1437_s30, %s1438_s14  }
 0x2ac   : > { %1411 = dma.done.wait (%p290_p2), [#allocation4], 1024  }
 0x2ad   : > { %1413 = vsyncadd (%p290_p2), [#allocation4], 4294966272 }
 0x2ae PF: > { %p1297_p10 = scmp.ge.s32.totalorder %s1432_s20, 2  ;;  %s1097_s2 = sand.u32 1, %s1420_s17  }
 0x2af   : > { %s1098_s0 = scalar_lea.sflag [#allocation6], %s1097_s2 }
 0x2b0   : > { %p1292_p11 = pnand %p1297_p10, %p1543_p6 }
 0x2b2   : > { %p1293_p12 = pneg %p1292_p11 }
 0x2b4   : > { %1415 = dma.done.wait (%p1293_p12), %s1098_s0, 2048  }
 0x2b5   : > { %1417 = vsyncadd (%p1293_p12), %s1098_s0, 4294965248  ;;  %s1872_s20 = sld [smem:[#allocation10_spill]]  ;;  %s1875_s17 = smov %s1424_s18 }
 0x2b6   : > { %s1873_s27 = sld [smem:[#allocation9_spill]] }
 0x2b7   : > { %s1874_s19 = sld [smem:[#allocation11_spill]] }
 0x2bb   : > { %p23_p5 = scmp.ge.s32.totalorder %s1872_s20, 5  }
 0x2bc   : > { %s1876_s18 = smov %s1873_s27 }
 0x2bd   :  { %25 = sbr.rel (!%p23_p5) target bundleno = 8 (0x8), region = 118 }
 0x2c2   :  { %1104 = vsyncpa [#allocation4], 1 }
 0x2c3   :  { %1106 = vsyncpa [#allocation4 + $0x1], 1 }
 0x2c4   :  { %1107 = vsyncpa [#allocation6], 1 }
 0x2c5   :  { %1109 = vsyncpa [#allocation6 + $0x1], 1 }

</bundles_post_ra>
